<compile_context>
chip_gen: v7x
topology: tpu7x:2x2x1
jax: 0.10.0
libtpu: 0.0.40
codegen_flags: <defaults>
</compile_context>

<pallas_src>
import functools

import jax
import jax.numpy as jnp
from jax.experimental import pallas as pl
from jax.experimental.pallas import tpu as pltpu


def _round_up(x, m):
    return ((x + m - 1) // m) * m


@functools.lru_cache(maxsize=1)
def _vmem_cap_bytes():
    """Physical VMEM per TensorCore; conservative 64 MiB (v7x) if unknown."""
    try:
        cap = getattr(pltpu.get_tpu_info(), "vmem_capacity_bytes", None)
        if cap:
            return int(cap)
    except Exception:
        pass
    return 64 << 20


def _conv1d_kernel(*refs, kernel_size, stride, tile_l, c_in_pad, halo,
                   taps_per_chunk, has_bias):
    # refs: x_ref (stride, 1, C_in_pad, Lp_dec)   phase-decimated, zero-padded
    #       w_ref (C_out, K*C_in_pad)             im2col-flattened weights
    #       [b_ref (C_out, 1) f32]                only when has_bias
    #       o_ref (1, C_out, TILE_L)              lane-dense output tile
    if has_bias:
        x_ref, w_ref, b_ref, o_ref = refs
    else:
        x_ref, w_ref, o_ref = refs
        b_ref = None

    j = pl.program_id(1)
    base = pl.multiple_of(j * tile_l, 128)
    win = tile_l + halo
    n_phases = min(stride, kernel_size)

    # One 128-aligned, full-width load per phase plane; every tap is derived
    # from it with a static (register-level) shift instead of K separate
    # lane-misaligned VMEM loads of essentially the same data.
    windows = [x_ref[r, 0, :, pl.ds(base, win)] for r in range(n_phases)]

    def tap(kk):
        r = kk % stride            # phase plane
        q = kk // stride           # shift inside the phase plane (q <= halo)
        w_r = windows[r]
        if q == 0:
            return w_r[:, :tile_l] if halo else w_r
        return w_r[:, q:q + tile_l]   # static slice -> XLU shift, no VMEM re-read

    # Chunked im2col accumulation: keep the MXU contraction deep while bounding
    # the live (rows, TILE_L) value to the vreg file.
    acc = None
    for k0 in range(0, kernel_size, taps_per_chunk):
        k1 = min(k0 + taps_per_chunk, kernel_size)
        taps = [tap(kk) for kk in range(k0, k1)]
        col = taps[0] if len(taps) == 1 else jnp.concatenate(taps, axis=0)
        w_chunk = w_ref[:, k0 * c_in_pad:k1 * c_in_pad]
        part = jnp.dot(w_chunk, col, preferred_element_type=jnp.float32)
        acc = part if acc is None else acc + part

    if has_bias:
        acc = acc + b_ref[...]     # (C_out, 1) broadcasts over lanes
    o_ref[0] = acc.astype(o_ref.dtype)


def _conv1d_single(x, weight, bias, *, stride, padding, tile_l, compute_dtype):
    n, c_in, length = x.shape
    c_out, c_in_w, k = weight.shape
    assert c_in == c_in_w and stride >= 1

    l_out = (length + 2 * padding - k) // stride + 1
    assert l_out > 0

    c_in_pad = _round_up(c_in, 8)       # sublane-aligned taps / concat
    n_phases = min(stride, k)

    # tile_l default: largest 128-multiple keeping live vregs (col chunk + f32
    # acc + per-phase windows) comfortably under the 64-vreg file.
    if tile_l is None:
        col_grps = -(-min(k * c_in_pad, 128) // 8)
        acc_grps = -(-c_out // 8)
        win_grps = n_phases * (c_in_pad // 8)
        live = col_grps + acc_grps + win_grps
        tile_l = 128 * max(1, min(16, 44 // max(live, 1)))
        tile_l = min(tile_l, _round_up(l_out, 128))
    assert tile_l % 128 == 0 and tile_l > 0
    num_tiles = pl.cdiv(l_out, tile_l)

    # Halo inside one phase plane (taps reach q = 0..(k-1)//stride ahead).
    q_max = (k - 1) // stride
    halo = _round_up(q_max, 128) if q_max > 0 else 0
    lp_dec = num_tiles * tile_l + halo            # per-phase length (128-multiple)
    lp_total = lp_dec * stride

    # Single combined pad: channel pad + conv left-pad + (halo/alignment) right-pad.
    right = lp_total - padding - length
    ch_pad = c_in_pad - c_in
    if right >= 0:
        x_pad = jnp.pad(x, ((0, 0), (0, ch_pad), (padding, right)))
    else:
        # Tail beyond the last conv window is never read; crop it.
        x_pad = jnp.pad(x[:, :, :length + right], ((0, 0), (0, ch_pad), (padding, 0)))

    # Phase decimation: x_ph[r, b, i, p] = x_pad[b, i, stride*p + r]
    # (stride == 1: pure reshape, no data movement).
    x_ph = x_pad.reshape(n, c_in_pad, lp_dec, stride).transpose(3, 0, 1, 2)

    # im2col-flattened weight with zero rows for padded channels:
    # w2d[o, kk*C_in_pad + i] = W[o, i, kk].
    w2d = jnp.transpose(weight, (0, 2, 1))
    if ch_pad:
        w2d = jnp.pad(w2d, ((0, 0), (0, 0), (0, ch_pad)))
    w2d = w2d.reshape(c_out, k * c_in_pad)

    if compute_dtype is not None:       # bf16 opt-in; accumulation stays f32
        x_ph = x_ph.astype(compute_dtype)
        w2d = w2d.astype(compute_dtype)

    has_bias = bias is not None
    operands = [x_ph, w2d]
    in_specs = [
        pl.BlockSpec((stride, 1, c_in_pad, lp_dec), lambda b, j: (0, b, 0, 0)),
        pl.BlockSpec((c_out, k * c_in_pad), lambda b, j: (0, 0)),
    ]
    if has_bias:
        operands.append(bias.reshape(c_out, 1).astype(jnp.float32))
        in_specs.append(pl.BlockSpec((c_out, 1), lambda b, j: (0, 0)))

    # Bound the live im2col chunk to ~24 vregs.
    lane_grps = tile_l // 128
    taps_per_chunk = max(1, (24 * 8) // (lane_grps * c_in_pad))

    kernel = functools.partial(
        _conv1d_kernel, kernel_size=k, stride=stride, tile_l=tile_l,
        c_in_pad=c_in_pad, halo=halo, taps_per_chunk=taps_per_chunk,
        has_bias=has_bias)

    elt = jnp.dtype(x_ph.dtype).itemsize
    out_elt = jnp.dtype(x.dtype).itemsize
    cost = pl.CostEstimate(
        flops=2 * n * c_out * c_in_pad * k * l_out,
        transcendentals=0,
        bytes_accessed=(x_ph.size * elt + w2d.size * elt
                        + n * c_out * l_out * out_elt))

    # x is double-buffered by the pipeline even though its block index only
    # changes once per sample; the wrapper-level L chunking keeps this bounded.
    # Cap the request at 75% of physical VMEM instead of the full capacity.
    footprint = (2 * stride * c_in_pad * lp_dec * elt
                 + 2 * c_out * tile_l * out_elt
                 + 2 * c_out * k * c_in_pad * elt
                 + (2 << 20))
    vmem_limit = int(min(max(footprint, 16 << 20), _vmem_cap_bytes() * 3 // 4))

    # v7x has 2 TensorCores: put the megacore split on the batch axis when
    # possible so the resident per-sample input is not DMA'd by both cores.
    dim_sem = ("parallel", "arbitrary") if n > 1 else ("arbitrary", "parallel")

    return pl.pallas_call(
        kernel,
        out_shape=jax.ShapeDtypeStruct((n, c_out, l_out), x.dtype),
        grid_spec=pltpu.PrefetchScalarGridSpec(
            num_scalar_prefetch=0,
            grid=(n, num_tiles),
            in_specs=in_specs,
            out_specs=pl.BlockSpec((1, c_out, tile_l), lambda b, j: (b, 0, j)),
        ),
        compiler_params=pltpu.CompilerParams(
            dimension_semantics=dim_sem,
            vmem_limit_bytes=vmem_limit),
        cost_estimate=cost,
    )(*operands)


def conv1d_pallas(x, weight, bias=None, *, stride=1, padding=0, tile_l=None,
                  compute_dtype=None, input_vmem_budget_bytes=None):
    """nn.Conv1d forward. x: (N, C_in, L), weight: (C_out, C_in, K), bias: (C_out,)|None."""
    n, c_in, length = x.shape
    c_out, c_in_w, k = weight.shape
    assert c_in == c_in_w and stride >= 1
    l_out = (length + 2 * padding - k) // stride + 1
    assert l_out > 0

    c_in_pad = _round_up(c_in, 8)
    elt = jnp.dtype(compute_dtype if compute_dtype is not None else x.dtype).itemsize
    if input_vmem_budget_bytes is None:
        input_vmem_budget_bytes = min(_vmem_cap_bytes() // 4, 16 << 20)

    # Estimated double-buffered per-sample resident input (incl. halo/rounding slack).
    resident = 2 * c_in_pad * (length + 2 * padding + 256 * stride) * elt
    if resident <= input_vmem_budget_bytes or l_out < 2:
        return _conv1d_single(x, weight, bias, stride=stride, padding=padding,
                              tile_l=tile_l, compute_dtype=compute_dtype)

    # Wrapper-level L-tiling with halo: bounds per-call VMEM irrespective of
    # sequence length; each chunk still reads its input from HBM exactly once.
    n_chunks = min(l_out, -(-resident // input_vmem_budget_bytes))
    chunk_out = -(-l_out // n_chunks)
    x_full = jnp.pad(x, ((0, 0), (0, 0), (padding, padding))) if padding else x
    outs = []
    for o0 in range(0, l_out, chunk_out):
        o1 = min(o0 + chunk_out, l_out)
        i0 = o0 * stride
        i1 = (o1 - 1) * stride + k
        outs.append(_conv1d_single(x_full[:, :, i0:i1], weight, bias,
                                   stride=stride, padding=0,
                                   tile_l=tile_l, compute_dtype=compute_dtype))
    return jnp.concatenate(outs, axis=2)


def _reference_conv1d(x, weight, bias, *, stride, padding):
    out = jax.lax.conv_general_dilated(
        x, weight,
        window_strides=(stride,),
        padding=[(padding, padding)],
        dimension_numbers=("NCH", "OIH", "NCH"),
    )
    if bias is not None:
        out = out + bias[None, :, None]
    return out


if __name__ == "__main__":
    root = jax.random.PRNGKey(0)
    key1, key2, key3 = jax.random.split(root, 3)

    def make_inputs(key, n, c_in, c_out, length, ksize):
        kx, kw, kb = jax.random.split(key, 3)
        x = jax.random.normal(kx, (n, c_in, length), dtype=jnp.float32)
        bound = 1.0 / (c_in * ksize) ** 0.5          # PyTorch-style init bound
        w = jax.random.uniform(kw, (c_out, c_in, ksize), jnp.float32, -bound, bound)
        b = jax.random.uniform(kb, (c_out,), jnp.float32, -bound, bound)
        return x, w, b

    # Test 1: small config — batch=2, C_in=4, C_out=8, L=16, K=3, stride=1,
    #         padding=1, bias.
    x1, w1, b1 = make_inputs(key1, 2, 4, 8, 16, 3)
    out1 = jax.block_until_ready(conv1d_pallas(x1, w1, b1, stride=1, padding=1))
    ref1 = _reference_conv1d(x1, w1, b1, stride=1, padding=1)
    assert out1.shape == ref1.shape, (out1.shape, ref1.shape)
    assert jnp.allclose(out1, ref1, atol=2e-5, rtol=2e-5), "mismatch (test 1)"

    # Test 2: stride=2, padding=2, K=5, no bias, odd channel counts,
    #         two L_out tiles (explicit tile_l=128 forces the multi-tile path).
    x2, w2, _ = make_inputs(key2, 2, 3, 5, 320, 5)
    out2 = jax.block_until_ready(
        conv1d_pallas(x2, w2, None, stride=2, padding=2, tile_l=128))
    ref2 = _reference_conv1d(x2, w2, None, stride=2, padding=2)
    assert out2.shape == ref2.shape, (out2.shape, ref2.shape)
    assert jnp.allclose(out2, ref2, atol=2e-5, rtol=2e-5), "mismatch (test 2)"

    # Test 3: bf16 compute path (v6e/v7x), f32 accumulation — loose tolerance.
    out3 = jax.block_until_ready(
        conv1d_pallas(x1, w1, b1, stride=1, padding=1,
                      compute_dtype=jnp.bfloat16))
    assert jnp.allclose(out3, ref1, atol=1e-1, rtol=1e-1), "mismatch (test 3)"

    # Test 4: long sequence with an artificially small budget to exercise the
    #         wrapper-level L-split (halo) path.
    x4, w4, b4 = make_inputs(key3, 1, 4, 8, 4096, 3)
    out4 = jax.block_until_ready(
        conv1d_pallas(x4, w4, b4, stride=1, padding=1,
                      input_vmem_budget_bytes=128 << 10))
    ref4 = _reference_conv1d(x4, w4, b4, stride=1, padding=1)
    assert out4.shape == ref4.shape, (out4.shape, ref4.shape)
    assert jnp.allclose(out4, ref4, atol=2e-5, rtol=2e-5), "mismatch (test 4)"

    print("KERNEL_OK")
</pallas_src>

<mosaic_0001>
module attributes {stable_mosaic.version = 11 : i64} {
  func.func @_conv1d_kernel(%arg0: i32, %arg1: i32, %arg2: memref<1x1x8x256xf32, #tpu.memory_space<vmem>>, %arg3: memref<8x24xf32, #tpu.memory_space<vmem>>, %arg4: memref<8x1xf32, #tpu.memory_space<vmem>>, %arg5: memref<1x8x128xf32, #tpu.memory_space<vmem>>) attributes {dimension_semantics = [#tpu.dimension_semantics<parallel>, #tpu.dimension_semantics<arbitrary>], iteration_bounds = array<i64: 2, 1>, scalar_prefetch = 0 : i64, scratch_operands = 0 : i64, tpu.core_type = #tpu.core_type<tc>, window_params = [{transform_indices = @transform_0, window_bounds = array<i64: 1, 1, 8, 256>}, {pipeline_mode = #tpu.pipeline_mode<synchronous>, transform_indices = @transform_1, window_bounds = array<i64: 8, 24>}, {pipeline_mode = #tpu.pipeline_mode<synchronous>, transform_indices = @transform_2, window_bounds = array<i64: 8, 1>}, {transform_indices = @transform_3, window_bounds = array<i64: 1, 8, 128>}]} {
    %c128_i32 = arith.constant 128 : i32
    %0 = arith.muli %arg1, %c128_i32 : i32
    %1 = tpu.assume_multiple %0, 128 : i32
    %c0 = arith.constant 0 : index
    %c0_0 = arith.constant 0 : index
    %c0_1 = arith.constant 0 : index
    %2 = arith.index_cast %1 : i32 to index
    %3 = vector.load %arg2[%c0, %c0_0, %c0_1, %2] : memref<1x1x8x256xf32, #tpu.memory_space<vmem>>, vector<1x1x8x256xf32>
    %4 = vector.shape_cast %3 : vector<1x1x8x256xf32> to vector<8x256xf32>
    %5 = vector.extract_strided_slice %4 {offsets = [0, 0], sizes = [8, 128], strides = [1, 1]} : vector<8x256xf32> to vector<8x128xf32>
    %6 = vector.extract_strided_slice %4 {offsets = [0, 1], sizes = [8, 128], strides = [1, 1]} : vector<8x256xf32> to vector<8x128xf32>
    %7 = vector.extract_strided_slice %4 {offsets = [0, 2], sizes = [8, 128], strides = [1, 1]} : vector<8x256xf32> to vector<8x128xf32>
    %8 = tpu.concatenate %5, %6, %7 in 0 : vector<8x128xf32>, vector<8x128xf32>, vector<8x128xf32> -> vector<24x128xf32>
    %c0_2 = arith.constant 0 : index
    %c0_3 = arith.constant 0 : index
    %9 = vector.load %arg3[%c0_2, %c0_3] : memref<8x24xf32, #tpu.memory_space<vmem>>, vector<8x24xf32>
    %cst = arith.constant dense<0.000000e+00> : vector<8x128xf32>
    %10 = tpu.matmul %9, %8, %cst {dimension_numbers = #tpu.dot_dimension_numbers<[1], [0], [0], [1], [0, 0, 1, 1], [], []>} : vector<8x24xf32>, vector<24x128xf32>, vector<8x128xf32> -> vector<8x128xf32>
    %c0_4 = arith.constant 0 : index
    %c0_5 = arith.constant 0 : index
    %11 = vector.load %arg4[%c0_4, %c0_5] : memref<8x1xf32, #tpu.memory_space<vmem>>, vector<8x1xf32>
    %12 = vector.broadcast %11 : vector<8x1xf32> to vector<8x128xf32>
    %13 = arith.addf %10, %12 : vector<8x128xf32>
    %c0_6 = arith.constant 0 : index
    %c0_7 = arith.constant 0 : index
    %c0_8 = arith.constant 0 : index
    %14 = vector.load %arg5[%c0_6, %c0_7, %c0_8] : memref<1x8x128xf32, #tpu.memory_space<vmem>>, vector<1x8x128xf32>
    %15 = vector.shape_cast %14 : vector<1x8x128xf32> to vector<8x128xf32>
    %16 = vector.shape_cast %13 : vector<8x128xf32> to vector<1x8x128xf32>
    tpu.vector_store %arg5[%c0_6, %c0_7, %c0_8], %16 {strides = array<i32>} : memref<1x8x128xf32, #tpu.memory_space<vmem>>, vector<1x8x128xf32>,
    return
  }
  func.func @transform_0(%arg0: i32, %arg1: i32) -> (i32, i32, i32, i32) {
    %c0_i32 = arith.constant 0 : i32
    %c0_i32_0 = arith.constant 0 : i32
    %c0_i32_1 = arith.constant 0 : i32
    %c0_i32_2 = arith.constant 0 : i32
    return %c0_i32, %arg0, %c0_i32_0, %c0_i32_1 : i32, i32, i32, i32
  }
  func.func @transform_1(%arg0: i32, %arg1: i32) -> (i32, i32) {
    %c0_i32 = arith.constant 0 : i32
    %c0_i32_0 = arith.constant 0 : i32
    %c0_i32_1 = arith.constant 0 : i32
    return %c0_i32, %c0_i32_0 : i32, i32
  }
  func.func @transform_2(%arg0: i32, %arg1: i32) -> (i32, i32) {
    %c0_i32 = arith.constant 0 : i32
    %c0_i32_0 = arith.constant 0 : i32
    %c0_i32_1 = arith.constant 0 : i32
    return %c0_i32, %c0_i32_0 : i32, i32
  }
  func.func @transform_3(%arg0: i32, %arg1: i32) -> (i32, i32, i32) {
    %c0_i32 = arith.constant 0 : i32
    %c0_i32_0 = arith.constant 0 : i32
    return %arg0, %c0_i32, %arg1 : i32, i32, i32
  }
}

</mosaic_0001>

<bundles_post_ra>
// kernel: tpu_custom_call.1
= control target key start
LH: loop header
LB: loop body
LE: loop exit
PB: predicated region body
PF: predicated region fallthrough
CT: control target
= control target key end

     0   :  { %8 = vsyncpa [#allocation3], 0  ;;  %s830_s0 = inlined_call_operand.hbm [shape: f32[1,2,8,256], index: 0, kind: input, shape index: {}]   ;;  %s831_s1 = inlined_call_operand.vmem [shape: f32[8,24], index: 1, kind: input, shape index: {}]   ;;  %s832_s2 = inlined_call_operand.vmem [shape: f32[8,1], index: 2, kind: input, shape index: {}]   ;;  %s833_s3 = inlined_call_operand.hbm [shape: f32[2,8,16], index: 3, kind: output, shape index: {}]  }
   0x1   :  { %10 = vsyncpa [#allocation3 + $0x1], 0 }
   0x2   :  { %11 = vsyncpa [#allocation4], 0 }
   0x3   :  { %13 = vsyncpa [#allocation4 + $0x1], 0  ;;  %s651_s12 = smov 0   ;;  %s653_s13 = smov 0  }
   0x4   :  { %s655_s14 = smov 0   ;;  %s657_s15 = smov 0  }
   0x5   :  { %s659_s16 = smov 0   ;;  %s661_s17 = smov 0  }
   0x6 LB: > { %s402_s18 = sadd.s32 4294967295, %s621_s17   ;;  %s403_s19 = sadd.s32 4294967294, %s621_s17   ;;  %s621_s17 = sphi %s661_s17, %s19_s17   ;;  %s617_s16 = sphi %s659_s16, %s849_s16   ;;  %s613_s15 = sphi %s657_s15, %s848_s15   ;;  %s609_s14 = sphi %s655_s14, %s847_s14   ;;  %s605_s13 = sphi %s653_s13, %s846_s13   ;;  %s601_s12 = sphi %s651_s12, %s845_s12  }
   0x7   : > { %s31_s20 = sadd.s32 1, %s617_s16  ;;  %s38_s21 = sadd.s32 1, %s609_s14 }
   0x8   : > { %p33_p0 = scmp.ge.s32.totalorder %s31_s20, 2  ;;  %p45_p1 = scmp.ne.s32.totalorder %s609_s14, %s605_s13 }
   0x9   : > { %p46_p2 = scmp.eq.s32.totalorder %s621_s17, 0  ;;  %p51_p3 = scmp.ne.s32.totalorder %s605_s13, %s601_s12 }
   0xa   : > { %s851_s20 = smov (%p33_p0, %s31_s20), 0  ;;  %p52_p5 = scmp.eq.s32.totalorder %s402_s18, 0 }
   0xb   : > { %p692_p4 = por %p46_p2, %p45_p1  ;;  %s35_s23 = ssub.s32 %s617_s16, %s851_s20 }
   0xc   : > { %p119_p6 = scmp.eq.s32.totalorder %s402_s18, 1  ;;  %p36_p7 = scmp.eq.s32.totalorder %s35_s23, 0 }
   0xd   : > { %p698_p8 = por %p52_p5, %p51_p3  ;;  %p125_p10 = scmp.eq.s32.totalorder %s403_s19, 1 }
   0xe   : > { %p702_p9 = por %p119_p6, %p45_p1  ;;  %p446_p13 = scmp.lt.s32.totalorder %s621_s17, 2 }
   0xf   : > { %s707_s26 = scalar_select %p36_p7, %s609_s14, %s38_s21  }
  0x10   : > { %s837_s25 = scalar_select %p702_p9, 1, 0 }
  0x11   : > { %p709_p11 = por %p125_p10, %p51_p3  ;;  %s151_s28 = sand.u32 1, %s609_s14  }
  0x12   : > { %s406_s29 = sshll.u32 %s151_s28, 4  ;;  %s417_s30 = sshll.u32 %s617_s16, 8 }
  0x13   : > { %s838_s27 = scalar_select %p709_p11, 1, 0 }
  0x14   : > { %s720_s6 = scalar_lea.hbm %s830_s0, %s417_s30  ;;  %s155_s7 = scalar_lea.vmem [#allocation2], %s406_s29 }
  0x15   : > { %s163_s8 = sshll.u32 %s155_s7, 4  ;;  %p726_p0 = pnand %p446_p13, %p692_p4  ;;  %s722_s8 = int_to_ptr.vmem [resolvable:$true] %s163_s8 }
  0x16   : > { %s152_s10 = scalar_lea.sflag [#allocation3], %s151_s28  ;;  %s509_s11 = scalar_lea.hbm %s720_s6, 256 }
  0x17   : > { %p510_p3 = scmp.ne.s32.totalorder %s720_s6, %s509_s11  ;;  %p511_p5 = pneg %p726_p0 }
  0x18   : > { %s514_s21 = scalar_lea.hbm %s830_s0, 512  ;;  %p515_p4 = scmp.lt.u32.totalorder %s720_s6, %s830_s0 }
  0x19   : > { %p512_p6 = pnand %p511_p5, %p510_p3  ;;  %p516_p10 = scmp.lt.u32.totalorder %s514_s21, %s509_s11 }
  0x1a   : > { %p518_p12 = scmp.lt.u32.totalorder %s509_s11, %s720_s6 }
  0x1b   : > { %p513_p7 = pneg %p512_p6  ;;  %p517_p13 = por %p516_p10, %p515_p4 }
  0x1d   : > { %p519_p1 = por %p518_p12, %p517_p13 }
  0x1f   : > { %p520_p2 = pnand %p519_p1, %p513_p7 }
  0x21   : > { %523 = shalt.err (!%p520_p2)
}
  0x22   : > { %s524_s28 = scalar_lea.vmem %s722_s8, 256  ;;  %s623_s29 = smov [#allocation2]  }
  0x23   : > { %p525_p3 = scmp.ne.s32.totalorder %s722_s8, %s524_s28  ;;  %s529_s30 = sshll.u32 %s623_s29, 4  ;;  %s530_s30 = int_to_ptr.vmem [resolvable:$false] %s529_s30 }
  0x24   : > { %s531_s4 = scalar_lea.vmem %s530_s30, 512  ;;  %p532_p9 = scmp.lt.s32.totalorder %s722_s8, %s530_s30 }
  0x25   : > { %p527_p6 = pnand %p525_p3, %p511_p5  ;;  %p533_p4 = scmp.lt.s32.totalorder %s531_s4, %s524_s28 }
  0x27   : > { %p528_p11 = pneg %p527_p6  ;;  %p534_p10 = por %p533_p4, %p532_p9 }
  0x29   : > { %p535_p12 = pnand %p534_p10, %p528_p11 }
  0x2b   : > { %538 = shalt.err (!%p535_p12)
}
  0x2c   : > { %441 = dma.hbm_to_vmem [thread:$0]  (!%p726_p0), %s720_s6, 256, %s722_s8, %s152_s10  }
  0x2d   : > { %p840_p1 = scmp.lt.s32.totalorder %s621_s17, 3  ;;  %p841_p2 = scmp.ge.s32.totalorder %s621_s17, 1 }
  0x2f   : > { %p169_p5 = pnand %p841_p2, %p840_p1 }
  0x30   : > { %s762_s5 = sand.u32 (!%p169_p5), 1, %s605_s13  }
  0x31   : > { %172 = sbr.rel (%p169_p5) target bundleno = 413 (0x19d), region = 32  ;;  %s410_s7 = sshll.u32 (!%p169_p5), %s762_s5, 4 }
  0x32   : > { %s175_s11 = scalar_lea.sflag (!%p169_p5), [#allocation3], %s762_s5  ;;  %s178_s18 = scalar_lea.vmem (!%p169_p5), [#allocation2], %s410_s7 }
  0x38   : > { %592 = dma.done.wait (%p698_p8), %s175_s11, 256  }
  0x39   : > { %594 = vsyncadd (%p698_p8), %s175_s11, 4294967040  ;;  %v624_v0 = vmov 0.0|0.0   ;;  %vm625_vm0 = vmmov 0   ;;  %v626_v1 = vmov 0.0   ;;  %v206_v2 = vld [vmem:[%s178_s18] sm:$0xff]  ;;  %v207_v3 = vld [vmem:[%s178_s18 + $0x8] sm:$0xff] }
  0x3a   : > { %431 = vmatprep.subr.bf16.mxu0 %v624_v0  ;;  %428 = vmatprep.mubr.msk.f32.mxu0 %vm625_vm0, %v626_v1  ;;  %v502_v4 = vpack.i.bf16 %v207_v3, %v206_v2  ;;  %s627_s6 = smov 126   ;;  %v628_v5 = vmov 0   ;;  %v225_v6 = vld [vmem:[%s832_s2] sm:$0xff]  ;;  %s629_s10 = smov 127   ;;  %vm214_vm1 = vcmask 1039360   ;;  %vm221_vm2 = vcmask 1031168  }
  0x3b   : > { %219 = vrot.lane.b32.xlu1 %v207_v3, %s627_s6  ;;  %508 = vset.pattern.permute.xlu0 %v628_v5  ;;  %v224_v15 = vld [vmem:[%s831_s1] sm:$0xff]  ;;  %vm231_vm3 = vcmask 195584   ;;  %s411_s21 = sshll.u32 %s762_s5, 3  ;;  %s414_s22 = sshll.u32 %s613_s15, 7 }
  0x3c   : > { %507 = vset.pattern.permute.xlu1 %v628_v5  ;;  %503 = vrot.lane.b32.xlu0 %v502_v4, %s629_s10  ;;  %s200_s23 = scalar_lea.vmem [#allocation5], %s411_s21  ;;  %s781_s4 = scalar_lea.hbm %s833_s3, %s414_s22 }
  0x3d   : > { %s321_s28 = sshll.u32 %s200_s23, 4  ;;  %s307_s7 = scalar_lea.sflag [#allocation4], %s762_s5  ;;  %s783_s28 = int_to_ptr.vmem [resolvable:$true] %s321_s28 }
  0x3e   : > { %s539_s11 = scalar_lea.vmem %s783_s28, 128  ;;  %p842_p9 = scmp.ne.s32.totalorder %s837_s25, 0 }
  0x3f   : > { %228 = vperm.xlu1 %507, %v225_v6   ;;  %p540_p8 = scmp.ne.s32.totalorder %s783_s28, %s539_s11  ;;  %s630_s15 = smov [#allocation5]  }
  0x40   : > { %217 = vrot.lane.b32.xlu0 %v206_v2, %s627_s6  ;;  %s543_s18 = sshll.u32 %s630_s15, 4  ;;  %s544_s18 = int_to_ptr.vmem [resolvable:$false] %s543_s18 }
  0x41   : > { %p541_p11 = pnand %p540_p8, %p842_p9  ;;  %s545_s6 = scalar_lea.vmem %s544_s18, 256 }
  0x42   : > { %p546_p7 = scmp.lt.s32.totalorder %s783_s28, %s544_s18  ;;  %p547_p13 = scmp.lt.s32.totalorder %s545_s6, %s539_s11 }
  0x43   : > { %p542_p0 = pneg %p541_p11 }
  0x44   : > { %p548_p3 = por %p547_p13, %p546_p7 }
  0x46   : > { %p549_p6 = pnand %p548_p3, %p542_p0 }
  0xad   : > { %v220_v12 = vpop.permute.xlu1 %219 }
  0xae   : > { %v504_v7 = vpop.permute.xlu0 %503 }
  0xaf   : > { %v506_v8 = vunpack.i.h.bf16 %v504_v7  ;;  %v505_v9 = vunpack.i.l.bf16 %v504_v7 }
  0xb1   : > { %v215_v10 = vsel %vm214_vm1, %v505_v9, %v506_v8 }
  0xb2   : > { %v432_v11 = vpack.c.bf16 %v215_v10, %v206_v2  ;;  %v218_v13 = vpop.permute.xlu0 %217 }
  0xb3   : > { %v222_v14 = vsel %vm221_vm2, %v218_v13, %v220_v12 }
  0xb4   : > { %433 = vmatpush3.bf16.msra.mxu0 %v432_v11 }
  0xb5   : > { %426 = vmatprep.subr.mxu0 %v626_v1 }
  0xb8   : > { %427 = vmatpush3.msra.mxu0 %v222_v14 }
  0xb9   : > { %429 = vmatmul.mubr.msk.f32.vlgmr.msra.gmra.mrb[0].mxu0 %vm231_vm3, %v224_v15 }
  0xbe   : > { %v229_v16 = vpop.permute.xlu1 %228 }
 0x18c   : > { %v301_v17 = vpop.f32.mrb[0].mxu0 }
 0x18d   : > { %v302_v18 = vadd.f32 %v301_v17, %v229_v16  ;;  %v430_v19 = vpop.f32.mrb[1].mxu0 }
 0x18f   : > { %305 = vst [vmem:[%s200_s23] sm:$0xff] %v302_v18 }
 0x190   : > { %552 = shalt.err (!%p549_p6)
}
 0x191   : > { %s553_s5 = scalar_lea.hbm %s781_s4, 128  ;;  %s557_s10 = scalar_lea.hbm %s833_s3, 256 }
 0x192   : > { %p554_p4 = scmp.ne.s32.totalorder %s781_s4, %s553_s5  ;;  %p558_p1 = scmp.lt.u32.totalorder %s781_s4, %s833_s3 }
 0x193   : > { %p559_p2 = scmp.lt.u32.totalorder %s557_s10, %s553_s5  ;;  %p561_p8 = scmp.lt.u32.totalorder %s553_s5, %s781_s4 }
 0x194   : > { %p555_p10 = pnand %p554_p4, %p842_p9 }
 0x195   : > { %p560_p5 = por %p559_p2, %p558_p1 }
 0x196   : > { %p556_p12 = pneg %p555_p10 }
 0x197   : > { %p562_p11 = por %p561_p8, %p560_p5 }
 0x199   : > { %p563_p0 = pnand %p562_p11, %p556_p12 }
 0x19b   : > { %566 = shalt.err (!%p563_p0)
}
 0x19c   : > { %436 = dma.vmem_to_hbm [thread:$0]  (%p842_p9), %s783_s28, 128, %s781_s4, %s307_s7  }
 0x19d PF: > { %s333_s21 = sand.u32 1, %s601_s12   ;;  %p843_p7 = scmp.ne.s32.totalorder %s838_s27, 0 }
 0x19e   : > { %p844_p13 = scmp.ge.s32.totalorder %s621_s17, 2  ;;  %s334_s22 = scalar_lea.sflag [#allocation4], %s333_s21 }
 0x1a0   : > { %p443_p3 = pnand %p844_p13, %p843_p7 }
 0x1a2   : > { %596 = dma.done.wait (!%p443_p3), %s334_s22, 128  }
 0x1a3   : > { %598 = vsyncadd (!%p443_p3), %s334_s22, 4294967168  ;;  %s19_s17 = sadd.s32 1, %s621_s17   ;;  %s845_s12 = smov %s605_s13 }
 0x1a4   : > { %p16_p6 = scmp.ge.s32.totalorder %s19_s17, 4   ;;  %s846_s13 = smov %s609_s14 }
 0x1a5   : > { %s847_s14 = smov %s707_s26  ;;  %s848_s15 = smov %s617_s16 }
 0x1a6   : > { %s849_s16 = smov %s851_s20  ;;  %18 = sbr.rel (!%p16_p6) target bundleno = 6 (0x6), region = 78 }
 0x1ad   :  { %339 = vsyncpa [#allocation3], 1 }
 0x1ae   :  { %341 = vsyncpa [#allocation3 + $0x1], 1 }
 0x1af   :  { %342 = vsyncpa [#allocation4], 1 }
 0x1b0   :  { %344 = vsyncpa [#allocation4 + $0x1], 1 }

</bundles_post_ra>
